<compile_context>
chip_gen: v5e
topology: v5e:2x2
jax: 0.10.0
libtpu: 0.0.40
codegen_flags: <defaults>
</compile_context>

<pallas_src>
import jax
import jax.numpy as jnp
from jax.experimental import pallas as pl
from jax.experimental.pallas import tpu as pltpu


def _affine_kernel(ab_ref, x_ref, o_ref):
    # ab_ref: (2,) in SMEM (scalar prefetch) -> [a, b] folded scalars.
    # x_ref : (tile_r, C) input voxel tile in VMEM.
    # o_ref : (tile_r, C) output voxel tile in VMEM.
    a = ab_ref[0]
    b = ab_ref[1]
    o_ref[...] = (a * x_ref[...] + b).astype(o_ref.dtype)


def _pick_lane_width(P, suffix_products, cap=2048):
    """Largest multiple of 128 <= cap that exactly divides P (zero-copy reshape).

    Falls back to a natural suffix product of the input dims (still a zero-copy
    reshape, possibly < 128 lanes -> masked stores) when P has no suitable
    128-multiple divisor.
    """
    c = (min(cap, P) // 128) * 128
    while c >= 128:
        if P % c == 0:
            return c
        c -= 128
    for cand in suffix_products:
        if cand <= cap:
            return cand
    return suffix_products[-1]


def contrast_conversion_forward(x, w1, b1, w2, b2, *,
                                target_tile_bytes=4 * 1024 * 1024,
                                lane_cap=2048):
    """x: (N, 1, D, H, W). Equivalent to Conv3d(1,10,k=1) -> Conv3d(10,1,k=1)."""
    N, C_in, D, H, W = x.shape
    assert C_in == 1, "ContrastConversionModel expects a single input channel"
    P = N * D * H * W
    itemsize = jnp.dtype(x.dtype).itemsize

    # ---- fold the two 1x1x1 convs into one exact per-voxel affine (wrapper-side).
    w1v = w1.reshape(-1).astype(jnp.float32)       # (C_hidden,)  since C_in = 1
    b1v = b1.reshape(-1).astype(jnp.float32)
    w2v = w2.reshape(-1).astype(jnp.float32)       # (C_hidden,)  since C_out = 1
    b2s = b2.reshape(-1)[0].astype(jnp.float32)
    a = jnp.dot(w2v, w1v)                          # scalar
    b = jnp.dot(w2v, b1v) + b2s                    # scalar
    ab = jnp.stack([a, b])                         # (2,) -> SMEM via scalar prefetch

    # ---- zero-copy relayout: view the voxels as an (R, C) slab with C | P.
    C = _pick_lane_width(P, (H * W, W), cap=lane_cap)
    R = P // C
    x2d = x.reshape(R, C)                          # contiguous reshape: no HBM copy

    # ---- row tiling: one block ~target_tile_bytes, clamped to the problem size.
    rows_per_tile = max(8, (target_tile_bytes // (C * itemsize)) // 8 * 8)
    tile_r = R if rows_per_tile >= R else int(rows_per_tile)
    grid = (pl.cdiv(R, tile_r),)                   # ragged last block -> masked stores

    out2d = pl.pallas_call(
        _affine_kernel,
        out_shape=jax.ShapeDtypeStruct((R, C), x.dtype),
        grid_spec=pltpu.PrefetchScalarGridSpec(
            num_scalar_prefetch=1,                 # ab -> SMEM, passed to index_maps
            grid=grid,
            in_specs=[pl.BlockSpec((tile_r, C), lambda i, ab_ref: (i, 0))],
            out_specs=pl.BlockSpec((tile_r, C), lambda i, ab_ref: (i, 0)),
        ),
        compiler_params=pltpu.CompilerParams(
            # "parallel" lets Mosaic shard the row-block axis across TensorCores
            # on multi-TC parts (v7x).
            # TODO(synk): evaluate pltpu.CORE_PARALLEL if xprof shows only one TC
            # streaming on v7x.
            dimension_semantics=("parallel",),
            # ~4x tile (in+out double-buffered) + headroom; within v5e/v6e/v7x.
            vmem_limit_bytes=32 * 1024 * 1024,
        ),
        cost_estimate=pl.CostEstimate(
            flops=2 * P,
            transcendentals=0,
            bytes_accessed=2 * P * itemsize,       # read + write: memory-bound
        ),
    )(ab, x2d)

    return out2d.reshape(N, 1, D, H, W)            # free reshape, no slice


def _reference_forward(x, w1, b1, w2, b2):
    # Pure-JAX reference of the two 1x1x1 conv3d layers (unfolded).
    h = x * w1.reshape(1, -1, 1, 1, 1) + b1.reshape(1, -1, 1, 1, 1)        # (N,10,D,H,W)
    y = jnp.einsum("oc,ncdhw->nodhw", w2.reshape(1, -1), h) + b2.reshape(1, 1, 1, 1, 1)
    return y


if __name__ == "__main__":
    key = jax.random.PRNGKey(0)
    k_x, k_w1, k_b1, k_w2, k_b2, k_x2, k_x3 = jax.random.split(key, 7)

    # Deterministic parameters (Conv3d(1,10,1) and Conv3d(10,1,1) shapes).
    w1 = jax.random.normal(k_w1, (10, 1, 1, 1, 1), dtype=jnp.float32) * 0.1
    b1 = jax.random.normal(k_b1, (10,), dtype=jnp.float32) * 0.1
    w2 = jax.random.normal(k_w2, (1, 10, 1, 1, 1), dtype=jnp.float32) * 0.1
    b2 = jax.random.normal(k_b2, (1,), dtype=jnp.float32) * 0.1

    # Test 1: small canonical shape (single block, clamped tile).
    x = jax.random.normal(k_x, (2, 1, 8, 16, 16), dtype=jnp.float32)
    out = jax.block_until_ready(contrast_conversion_forward(x, w1, b1, w2, b2))
    ref = _reference_forward(x, w1, b1, w2, b2)
    assert out.shape == x.shape
    assert jnp.allclose(out, ref, atol=1e-5, rtol=1e-5), "mismatch (test 1)"

    # Test 2: multi-step grid with a ragged last row-block (small tile target).
    x2 = jax.random.normal(k_x2, (1, 1, 12, 64, 64), dtype=jnp.float32)
    out2 = jax.block_until_ready(
        contrast_conversion_forward(x2, w1, b1, w2, b2, target_tile_bytes=128 * 1024))
    ref2 = _reference_forward(x2, w1, b1, w2, b2)
    assert jnp.allclose(out2, ref2, atol=1e-5, rtol=1e-5), "mismatch (test 2)"

    # Test 3: voxel count not divisible by 128 -> natural-suffix fallback, no pad.
    x3 = jax.random.normal(k_x3, (1, 1, 3, 5, 7), dtype=jnp.float32)
    out3 = jax.block_until_ready(contrast_conversion_forward(x3, w1, b1, w2, b2))
    ref3 = _reference_forward(x3, w1, b1, w2, b2)
    assert jnp.allclose(out3, ref3, atol=1e-5, rtol=1e-5), "mismatch (test 3)"

    print("KERNEL_OK")
</pallas_src>

<mosaic_0001>
module attributes {stable_mosaic.version = 11 : i64} {
  func.func @_affine_kernel(%arg0: i32, %arg1: memref<2xf32, #tpu.memory_space<smem>>, %arg2: memref<2x2048xf32, #tpu.memory_space<vmem>>, %arg3: memref<2x2048xf32, #tpu.memory_space<vmem>>) attributes {dimension_semantics = [#tpu.dimension_semantics<parallel>], iteration_bounds = array<i64: 1>, scalar_prefetch = 1 : i64, scratch_operands = 0 : i64, tpu.core_type = #tpu.core_type<tc>, window_params = [{transform_indices = @transform_0, window_bounds = array<i64: 2, 2048>}, {transform_indices = @transform_1, window_bounds = array<i64: 2, 2048>}]} {
    %c0 = arith.constant 0 : index
    %0 = memref.load %arg1[%c0] : memref<2xf32, #tpu.memory_space<smem>>
    %c1 = arith.constant 1 : index
    %1 = memref.load %arg1[%c1] : memref<2xf32, #tpu.memory_space<smem>>
    %c0_0 = arith.constant 0 : index
    %c0_1 = arith.constant 0 : index
    %2 = vector.load %arg2[%c0_0, %c0_1] : memref<2x2048xf32, #tpu.memory_space<vmem>>, vector<2x2048xf32>
    %3 = vector.broadcast %0 : f32 to vector<2x2048xf32>
    %4 = arith.mulf %3, %2 : vector<2x2048xf32>
    %5 = vector.broadcast %1 : f32 to vector<2x2048xf32>
    %6 = arith.addf %4, %5 : vector<2x2048xf32>
    %c0_2 = arith.constant 0 : index
    %c0_3 = arith.constant 0 : index
    %7 = vector.load %arg3[%c0_2, %c0_3] : memref<2x2048xf32, #tpu.memory_space<vmem>>, vector<2x2048xf32>
    tpu.vector_store %arg3[%c0_2, %c0_3], %6 {strides = array<i32>} : memref<2x2048xf32, #tpu.memory_space<vmem>>, vector<2x2048xf32>,
    return
  }
  func.func @transform_0(%arg0: i32, %arg1: memref<2xf32, #tpu.memory_space<smem>>) -> (i32, i32) {
    %c0_i32 = arith.constant 0 : i32
    %c0_i32_0 = arith.constant 0 : i32
    return %arg0, %c0_i32 : i32, i32
  }
  func.func @transform_1(%arg0: i32, %arg1: memref<2xf32, #tpu.memory_space<smem>>) -> (i32, i32) {
    %c0_i32 = arith.constant 0 : i32
    %c0_i32_0 = arith.constant 0 : i32
    return %arg0, %c0_i32 : i32, i32
  }
}

</mosaic_0001>

<bundles_post_ra>
// kernel: tpu_custom_call.1
= control target key start
LH: loop header
LB: loop body
LE: loop exit
PB: predicated region body
PF: predicated region fallthrough
CT: control target
= control target key end

     0   :  { %s139_s12 = smov [#allocation3]   ;;  %s166_s0 = inlined_call_operand.hbm [shape: f32[2], index: 0, kind: input, shape index: {}]   ;;  %s167_s1 = inlined_call_operand.hbm [shape: f32[2,2048], index: 1, kind: input, shape index: {}]   ;;  %s168_s2 = inlined_call_operand.hbm [shape: f32[2,2048], index: 2, kind: output, shape index: {}]  }
   0x1   :  { %s8_s11 = sshll.u32 %s166_s0, 4  ;;  %s9_s11 = int_to_ptr.hbm [resolvable:$true] %s8_s11 }
   0x2   :  { %11 = dma.hbm_to_smem %s9_s11, 16, %s139_s12, [#allocation2] }
   0x3   :  { %133 = dma.done.wait [#allocation2], 16 }
   0x4   :  { %134 = vsyncadd [#allocation2], 4294967280 }
   0x5   :  { %14 = sfence }
   0x6   :  { %15 = vsyncpa [#allocation5], 0 }
   0x7   :  { %16 = vsyncpa [#allocation6], 0  ;;  %s22_s15 = sshll.u32 %s167_s1, 4  ;;  %s140_s16 = smov [#allocation4]   ;;  %s23_s15 = int_to_ptr.hbm [resolvable:$true] %s22_s15 }
   0x8   :  { %s24_s17 = sshll.u32 %s140_s16, 4  ;;  %s25_s17 = int_to_ptr.vmem [resolvable:$true] %s24_s17 }
   0x9   :  { %27 = dma.hbm_to_vmem [thread:$0]  %s23_s15, 512, %s25_s17, [#allocation5]  }
   0xa   :  { %135 = dma.done.wait [#allocation5], 512  }
   0xb   :  { %136 = vsyncadd [#allocation5], 4294966784  ;;  %s32_s0 = sld [smem:[#allocation3]]  ;;  %v34_v0 = vld [vmem:[#allocation4] sm:$0xff]  ;;  %v35_v2 = vld [vmem:[#allocation4 + $0x8] sm:$0xff]  ;;  %s141_s1 = smov [#allocation7]  }
   0xc   :  { %s69_s18 = sld [smem:[#allocation3 + $0x1]]  ;;  %v36_v3 = vld [vmem:[#allocation4 + $0x10] sm:$0xff]  ;;  %v37_v8 = vld [vmem:[#allocation4 + $0x18] sm:$0xff]  ;;  %s57_s19 = sshll.u32 %s141_s1, 4  ;;  %s58_s19 = int_to_ptr.vmem [resolvable:$true] %s57_s19 }
   0xd   :  { %s59_s22 = sshll.u32 %s168_s2, 4  ;;  %s60_s22 = int_to_ptr.hbm [resolvable:$true] %s59_s22 }
  0x11   :  { %v38_v1 = vstv %s32_s0 }
  0x12   :  { %v39_v4 = vmul.f32 %v38_v1, %v34_v0  ;;  %v43_v5 = vstv %s69_s18  ;;  %v40_v6 = vmul.f32 %v38_v1, %v35_v2  ;;  %v41_v7 = vmul.f32 %v38_v1, %v36_v3 }
  0x13   :  { %v42_v9 = vmul.f32 %v38_v1, %v37_v8 }
  0x14   :  { %v44_v10 = vadd.f32 %v43_v5, %v39_v4  ;;  %v45_v11 = vadd.f32 %v43_v5, %v40_v6  ;;  %v46_v12 = vadd.f32 %v43_v5, %v41_v7 }
  0x15   :  { %v47_v13 = vadd.f32 %v43_v5, %v42_v9 }
  0x16   :  { %48 = vst [vmem:[#allocation7] sm:$0xff] %v44_v10 }
  0x17   :  { %49 = vst [vmem:[#allocation7 + $0x8] sm:$0xff] %v45_v11 }
  0x18   :  { %50 = vst [vmem:[#allocation7 + $0x10] sm:$0xff] %v46_v12 }
  0x19   :  { %51 = vst [vmem:[#allocation7 + $0x18] sm:$0xff] %v47_v13 }
  0x1a   :  { %62 = dma.vmem_to_hbm [thread:$0]  %s58_s19, 512, %s60_s22, [#allocation6]  }
  0x1b   :  { %137 = dma.done.wait [#allocation6], 512  }
  0x1c   :  { %138 = vsyncadd [#allocation6], 4294966784 }
  0x1d   :  { %67 = vsyncpa [#allocation5], 1 }
  0x1e   :  { %68 = vsyncpa [#allocation6], 1 }

</bundles_post_ra>
